<compile_context>
chip_gen: v5e
topology: v5e:2x2
jax: 0.10.0
libtpu: 0.0.40
codegen_flags: <defaults>
</compile_context>

<pallas_src>
import functools

import jax
import jax.numpy as jnp
from jax.experimental import pallas as pl
from jax.experimental.pallas import tpu as pltpu

_SUBLANE = 8


def _linear_kernel(x_ref, w_ref, b_ref, o_ref):
    # x_ref: (TM, D)   w_ref: (D, Npad)   b_ref: (1, Npad)   o_ref: (TM, Npad)
    acc = jnp.dot(x_ref[...], w_ref[...], preferred_element_type=jnp.float32)
    o_ref[...] = (acc + b_ref[...]).astype(o_ref.dtype)


def _round_up(v, m):
    return ((v + m - 1) // m) * m


def prepare_linear_params(weight, bias, x_dtype):
    """Pad nn.Linear params to a sublane-aligned output width.

    weight: (out_dim, D), bias: (out_dim,).  Returns (w_t, b2) with
    w_t: (D, n_pad) in x_dtype and b2: (1, n_pad) in float32.
    Hoist this out of the per-call path when the parameters are reused.
    """
    out_dim, d = weight.shape
    n_pad = _round_up(out_dim, _SUBLANE)           # 6 -> 8, not 128
    w_t = jnp.zeros((d, n_pad), dtype=x_dtype).at[:, :out_dim].set(
        weight.T.astype(x_dtype))
    b2 = jnp.zeros((1, n_pad), dtype=jnp.float32).at[:, :out_dim].set(
        bias.astype(jnp.float32))
    return w_t, b2


def _pick_tile_rows(B, D, x_itemsize, n_pad, out_itemsize,
                    target_tile_bytes=2 << 20, vmem_budget=16 << 20):
    """Batch tile sized by bytes (~2 MiB of x), clamped to a conservative
    double-buffered VMEM budget (v5e-safe) and to >= 2 grid steps when
    possible (v7x megacore)."""
    x_row = D * x_itemsize
    o_row = n_pad * out_itemsize
    # ~2 MiB of x per grid step.
    tm = max(_SUBLANE, target_tile_bytes // x_row)
    # Double-buffered x + out tiles must fit the scoped VMEM budget
    # (weight/bias are a few KiB and ignored here).
    per_row = 2 * x_row + 2 * o_row
    tm = min(tm, max(_SUBLANE, vmem_budget // per_row))
    # Guarantee >= 2 grid steps when the batch allows it (2nd TC on v7x).
    if B >= 2 * _SUBLANE:
        tm = min(tm, pl.cdiv(B, 2))
    tm = min(tm, B)
    if tm != B:
        tm = max(_SUBLANE, (tm // _SUBLANE) * _SUBLANE)
    return tm


@functools.partial(jax.jit, static_argnames=("xla_fallback_rows",))
def regresion_lineal_forward(x, weight, bias, *, xla_fallback_rows=0):
    """y = x @ weight.T + bias, matching nn.Linear(input_dim, 6).

    x: (B, D), weight: (out_dim, D), bias: (out_dim,).
    Set xla_fallback_rows (e.g. 4096) in production to skip the Pallas launch
    for tiny batches; left at 0 here so the kernel path is always exercised.
    """
    B, D = x.shape
    out_dim = weight.shape[0]

    if B <= xla_fallback_rows:
        # Launch + pipeline fixed costs exceed the whole op at tiny B.
        return x @ weight.T.astype(x.dtype) + bias

    # --- wrapper-side layout plumbing (hoistable if params are reused) ------
    w_t, b2 = prepare_linear_params(weight, bias, x.dtype)
    n_pad = w_t.shape[1]

    tm = _pick_tile_rows(B, D, x.dtype.itemsize, n_pad, x.dtype.itemsize)
    grid = (pl.cdiv(B, tm),)

    cost = pl.CostEstimate(
        flops=2 * B * D * n_pad,
        transcendentals=0,
        bytes_accessed=(x.size * x.dtype.itemsize
                        + w_t.size * w_t.dtype.itemsize
                        + b2.size * b2.dtype.itemsize
                        + B * n_pad * x.dtype.itemsize),
    )

    out_padded = pl.pallas_call(
        _linear_kernel,
        out_shape=jax.ShapeDtypeStruct((B, n_pad), x.dtype),
        grid=grid,
        in_specs=[
            pl.BlockSpec((tm, D), lambda i: (i, 0)),        # x: tiled over batch
            pl.BlockSpec((D, n_pad), lambda i: (0, 0)),     # weight: resident
            pl.BlockSpec((1, n_pad), lambda i: (0, 0)),     # bias: resident
        ],
        out_specs=pl.BlockSpec((tm, n_pad), lambda i: (i, 0)),
        compiler_params=pltpu.CompilerParams(
            # Batch tiles are independent -> shard across TCs on v7x.
            dimension_semantics=("parallel",),
        ),
        cost_estimate=cost,
    )(x, w_t, b2)

    # Slice the sublane padding away outside the kernel.
    return out_padded[:, :out_dim]


if __name__ == "__main__":
    # Deterministic synthetic params + inputs (PyTorch-style uniform init).
    input_dim = 32
    out_dim = 6
    batch = 16   # small demo shape; >= 2*8 so the tiled path has 2 grid steps

    key = jax.random.PRNGKey(0)
    kx, kw, kb = jax.random.split(key, 3)

    bound = 1.0 / (input_dim ** 0.5)
    weight = jax.random.uniform(kw, (out_dim, input_dim), jnp.float32,
                                minval=-bound, maxval=bound)
    bias = jax.random.uniform(kb, (out_dim,), jnp.float32,
                              minval=-bound, maxval=bound)
    x = jax.random.normal(kx, (batch, input_dim), jnp.float32)

    y = regresion_lineal_forward(x, weight, bias)
    y = jax.block_until_ready(y)

    # Sanity check against plain-JAX reference of the PyTorch semantics.
    y_ref = x @ weight.T + bias
    assert y.shape == (batch, out_dim)
    assert jnp.allclose(y, y_ref, atol=1e-5, rtol=1e-5)

    print("KERNEL_OK")
</pallas_src>

<mosaic_0001>
module attributes {stable_mosaic.version = 11 : i64} {
  func.func @_linear_kernel(%arg0: i32, %arg1: memref<8x32xf32, #tpu.memory_space<vmem>>, %arg2: memref<32x8xf32, #tpu.memory_space<vmem>>, %arg3: memref<1x8xf32, #tpu.memory_space<vmem>>, %arg4: memref<8x8xf32, #tpu.memory_space<vmem>>) attributes {dimension_semantics = [#tpu.dimension_semantics<parallel>], iteration_bounds = array<i64: 2>, scalar_prefetch = 0 : i64, scratch_operands = 0 : i64, tpu.core_type = #tpu.core_type<tc>, window_params = [{transform_indices = @transform_0, window_bounds = array<i64: 8, 32>}, {pipeline_mode = #tpu.pipeline_mode<synchronous>, transform_indices = @transform_1, window_bounds = array<i64: 32, 8>}, {pipeline_mode = #tpu.pipeline_mode<synchronous>, transform_indices = @transform_2, window_bounds = array<i64: 1, 8>}, {transform_indices = @transform_3, window_bounds = array<i64: 8, 8>}]} {
    %c0 = arith.constant 0 : index
    %c0_0 = arith.constant 0 : index
    %0 = vector.load %arg1[%c0, %c0_0] : memref<8x32xf32, #tpu.memory_space<vmem>>, vector<8x32xf32>
    %c0_1 = arith.constant 0 : index
    %c0_2 = arith.constant 0 : index
    %1 = vector.load %arg2[%c0_1, %c0_2] : memref<32x8xf32, #tpu.memory_space<vmem>>, vector<32x8xf32>
    %cst = arith.constant dense<0.000000e+00> : vector<8x8xf32>
    %2 = tpu.matmul %0, %1, %cst {dimension_numbers = #tpu.dot_dimension_numbers<[1], [0], [0], [1], [0, 0, 1, 1], [], []>} : vector<8x32xf32>, vector<32x8xf32>, vector<8x8xf32> -> vector<8x8xf32>
    %c0_3 = arith.constant 0 : index
    %c0_4 = arith.constant 0 : index
    %3 = vector.load %arg3[%c0_3, %c0_4] : memref<1x8xf32, #tpu.memory_space<vmem>>, vector<1x8xf32>
    %4 = vector.broadcast %3 : vector<1x8xf32> to vector<8x8xf32>
    %5 = arith.addf %2, %4 : vector<8x8xf32>
    %c0_5 = arith.constant 0 : index
    %c0_6 = arith.constant 0 : index
    %6 = vector.load %arg4[%c0_5, %c0_6] : memref<8x8xf32, #tpu.memory_space<vmem>>, vector<8x8xf32>
    tpu.vector_store %arg4[%c0_5, %c0_6], %5 {strides = array<i32>} : memref<8x8xf32, #tpu.memory_space<vmem>>, vector<8x8xf32>,
    return
  }
  func.func @transform_0(%arg0: i32) -> (i32, i32) {
    %c0_i32 = arith.constant 0 : i32
    %c0_i32_0 = arith.constant 0 : i32
    return %arg0, %c0_i32 : i32, i32
  }
  func.func @transform_1(%arg0: i32) -> (i32, i32) {
    %c0_i32 = arith.constant 0 : i32
    %c0_i32_0 = arith.constant 0 : i32
    %c0_i32_1 = arith.constant 0 : i32
    return %c0_i32, %c0_i32_0 : i32, i32
  }
  func.func @transform_2(%arg0: i32) -> (i32, i32) {
    %c0_i32 = arith.constant 0 : i32
    %c0_i32_0 = arith.constant 0 : i32
    %c0_i32_1 = arith.constant 0 : i32
    return %c0_i32, %c0_i32_0 : i32, i32
  }
  func.func @transform_3(%arg0: i32) -> (i32, i32) {
    %c0_i32 = arith.constant 0 : i32
    %c0_i32_0 = arith.constant 0 : i32
    return %arg0, %c0_i32 : i32, i32
  }
}

</mosaic_0001>

<bundles_post_ra>
// kernel: regresion_lineal_forward.1
= control target key start
LH: loop header
LB: loop body
LE: loop exit
PB: predicated region body
PF: predicated region fallthrough
CT: control target
= control target key end

     0   :  { %s301_s12 = smov 0   ;;  %s333_s0 = inlined_call_operand.vmem [shape: f32[16,32], index: 0, kind: input, shape index: {}]   ;;  %s334_s1 = inlined_call_operand.vmem [shape: f32[32,8], index: 1, kind: input, shape index: {}]   ;;  %s335_s2 = inlined_call_operand.vmem [shape: f32[1,8], index: 2, kind: input, shape index: {}]   ;;  %s336_s3 = inlined_call_operand.vmem [shape: f32[16,8], index: 3, kind: output, shape index: {}]  }
   0x1 LB: > { %s254_s13 = sadd.s32 4294967295, %s279_s12   ;;  %p258_p0 = scmp.ge.s32.totalorder %s279_s12, 1  ;;  %s279_s12 = sphi %s301_s12, %s13_s12  }
   0x2   : > { %p136_p1 = scmp.lt.s32.totalorder %s279_s12, 3 }
   0x4   : > { %p137_p2 = pnand %p258_p0, %p136_p1 }
   0x5   : > { %p158_p3 = scmp.lt.s32.totalorder (!%p137_p2), %s254_s13, 1 }
   0x6   : > { %140 = sbr.rel (%p137_p2) target bundleno = 148 (0x94), region = 32 }
   0xb   : > { %v170_v0 = vld [vmem:[%s334_s1 + $0x18] sm:$0xff]  ;;  %v169_v1 = vld [vmem:[%s334_s1 + $0x10] sm:$0xff]  ;;  %v168_v2 = vld [vmem:[%s334_s1 + $0x8] sm:$0xff]  ;;  %s338_s13 = smov (!%p158_p3, %s254_s13), 1  ;;  %vm175_vm0 = vcmask 261120   ;;  %vm199_vm1 = vcmask 64512  }
   0xc   : > { %191 = vmatpush.msra.mxu0 %v170_v0  ;;  %v167_v3 = vld [vmem:[%s334_s1] sm:$0xff]  ;;  %s259_s22 = sshll.u32 %s338_s13, 3 }
   0xd   : > { %s161_s25 = scalar_lea.vmem %s333_s0, %s259_s22  ;;  %v272_v5 = vld [vmem:[%s335_s2] ss:$0 sm:$0xff]  ;;  %s165_s30 = scalar_lea.vmem %s336_s3, %s259_s22 }
   0xe   : > { %192 = vmatpush.msra.mxu0 %v169_v1  ;;  %v166_v4 = vld [vmem:[%s161_s25] sm:$0xff] }
  0x10   : > { %193 = vmatpush.msra.mxu0 %v168_v2 }
  0x12   : > { %194 = vmatpush.msra.mxu0 %v167_v3 }
  0x13   : > { %261 = vmatmul.msk.f32.vlgmr.msra.gmra.mxu0 %vm175_vm0, %v166_v4 }
  0x90   : > { %v196_v6 = vpop.f32.mrf.mxu0 }
  0x91   : > { %v197_v7 = vadd.f32 %v272_v5, %v196_v6 }
  0x93   : > { %200 = vst.msk [vmem:[%s165_s30] sm:$0xff] %vm199_vm1, %v197_v7 }
  0x94 PF: > { %s13_s12 = sadd.s32 1, %s279_s12  }
  0x95   : > { %p10_p4 = scmp.ge.s32.totalorder %s13_s12, 4  }
  0x97   :  { %12 = sbr.rel (!%p10_p4) target bundleno = 1 (0x1), region = 62 }

</bundles_post_ra>
